<compile_context>
chip_gen: v7x
topology: tpu7x:2x2x1
jax: 0.10.0
libtpu: 0.0.40
codegen_flags: <defaults>
</compile_context>

<pallas_src>
import jax
import jax.numpy as jnp
from jax import lax
from jax.experimental import pallas as pl
from jax.experimental.pallas import tpu as pltpu

KSIZE = 5
PAD = 2
LANES = 128
DATA_OFF = 8   # data region starts on an 8-row (sublane tile) boundary
TAIL = 8       # >= PAD trailing zero rows; keeps the scratch 8-row aligned


def _silu(v):
    # Swish / SiLU: x * sigmoid(x).  sigmoid(x) = 0.5*(1 + tanh(x/2)):
    # one EUP transcendental, no f32 divide.  Used by kernel AND reference.
    return v * (0.5 * jnp.tanh(0.5 * v) + 0.5)


def _conv_pair(c, slot, wa_ref, wb_ref, wc_ref, b_ref, pad_ref, L):
    """Same-padded K=5 conv for one batch element with paired taps.

    c       : (L, 128) f32 activations of the previous layer.
    slot    : python int, ping-pong slot of pad_ref.
    wa_ref  : (256, Cout) = [w[0]; w[1]] stacked along the contraction dim.
    wb_ref  : (256, Cout) = [w[2]; w[3]].
    wc_ref  : (128, Cout) = w[4].
    b_ref   : (1, Cout).
    pad_ref : (2, DATA_OFF+L+TAIL, 256) staging scratch; halo rows and the
              row (DATA_OFF+L-1, lanes 128:256) are pre-zeroed per grid step.
    """
    cin = c.shape[1]                      # 128 for both conv2 and conv3 inputs
    # copy 0: tap k      -> rows [DATA_OFF, DATA_OFF+L), lanes 0:128 (aligned)
    pad_ref[slot, DATA_OFF:DATA_OFF + L, 0:cin] = c
    # copy 1: tap k+1    -> rows [DATA_OFF-1, DATA_OFF-1+L), lanes 128:256
    pad_ref[slot, DATA_OFF - 1:DATA_OFF - 1 + L, LANES:LANES + cin] = c

    base = DATA_OFF - PAD
    # taps 0+1 : one K=256 matmul
    acc = jnp.dot(pad_ref[slot, base:base + L, :], wa_ref[...],
                  preferred_element_type=jnp.float32)
    # taps 2+3 : one K=256 matmul
    acc = acc + jnp.dot(pad_ref[slot, base + 2:base + 2 + L, :], wb_ref[...],
                        preferred_element_type=jnp.float32)
    # tap 4    : K=128 matmul (lanes 0:128 only)
    acc = acc + jnp.dot(pad_ref[slot, base + 4:base + 4 + L, 0:LANES],
                        wc_ref[...], preferred_element_type=jnp.float32)
    return acc + b_ref[...]               # bias added once at the end


def _make_kernel(bb, seq_len):
    L = seq_len

    def kernel(x_ref, w1_ref, b1_ref,
               w2a_ref, w2b_ref, w2c_ref, b2_ref,
               w3a_ref, w3b_ref, w3c_ref, b3_ref,
               wo_ref, bo_ref, o_ref, pad_ref):
        # Zero ONLY the halo rows of both ping-pong slots, once per grid step
        # (megacore-safe: every grid step / every core re-zeroes its scratch).
        pad_ref[:, 0:DATA_OFF, :] = jnp.zeros((2, DATA_OFF, 2 * LANES),
                                              jnp.float32)
        pad_ref[:, DATA_OFF + L:DATA_OFF + L + TAIL, :] = jnp.zeros(
            (2, TAIL, 2 * LANES), jnp.float32)
        # Row DATA_OFF+L-1 in lanes 128:256 is read by the tap-2/3 slice but
        # never written by the (shifted) second staging copy -> must be zero.
        pad_ref[:, DATA_OFF + L - 1:DATA_OFF + L, LANES:2 * LANES] = jnp.zeros(
            (2, 1, LANES), jnp.float32)

        for b in range(bb):                       # static unroll over block
            slot = b & 1                          # ping-pong staging slot
            x = x_ref[b].astype(jnp.float32)      # (L, 15) im2col'd input
            # conv1 folded to a single (L,15)@(15,128) matmul.
            c = _silu(jnp.dot(x, w1_ref[...],
                              preferred_element_type=jnp.float32) + b1_ref[...])
            c = _silu(_conv_pair(c, slot, w2a_ref, w2b_ref, w2c_ref, b2_ref,
                                 pad_ref, L))     # (L, 128)
            c = _silu(_conv_pair(c, slot, w3a_ref, w3b_ref, w3c_ref, b3_ref,
                                 pad_ref, L))     # (L, 64)
            # Final Linear directly into (3, L): lane-dense output store; the
            # transposed-RHS contraction keeps any (L,64) relayout on the
            # otherwise-idle XLU (tiny vs. the conv matmuls).
            out = lax.dot_general(wo_ref[...], c, (((1,), (1,)), ((), ())),
                                  preferred_element_type=jnp.float32)
            o_ref[b] = (out + bo_ref[...]).astype(o_ref.dtype)

    return kernel


def _vmem_estimate(bb, T):
    """Rough VMEM footprint (bytes), including (8,128) layout padding."""
    rows = DATA_OFF + T + TAIL
    lane = lambda n: ((n + LANES - 1) // LANES) * LANES
    sub = lambda n: ((n + 7) // 8) * 8
    in_b = 2 * bb * sub(T) * lane(KSIZE * 3) * 4      # input block, 2 buffers
    out_b = 2 * bb * sub(3) * lane(T) * 4             # output block, 2 buffers
    scr_b = 2 * rows * 2 * LANES * 4                  # ping-pong staging
    return in_b + out_b + scr_b + (1 << 20)           # + weights/biases slack


def _pick_batch_block(B, T, budget=24 << 20):
    """Largest block that divides B and fits the VMEM budget, preferring an
    even grid length so v7x's two TensorCores get balanced work."""
    cands = [bb for bb in (8, 4, 2, 1)
             if B % bb == 0 and _vmem_estimate(bb, T) <= budget]
    if not cands:
        cands = [1]
    even = [bb for bb in cands if (B // bb) % 2 == 0]
    return (even or cands)[0]


def cnn4_forward(x, params, batch_block=None):
    """x: (T, B, 3) float32 -> (T, B, 3) float32 (matches CNN4.forward)."""
    T, B, F = x.shape
    assert F == 3
    w1, b1, w2, b2, w3, b3, wo, bo = params   # natural layouts (K, Cin, Cout)

    # ---- wrapper-side weight layout prep (pure plumbing) -------------------
    w1f = w1.reshape(KSIZE * 3, 128)                      # conv1 -> one matmul
    w2a = jnp.concatenate([w2[0], w2[1]], axis=0)         # (256,128) taps 0+1
    w2b = jnp.concatenate([w2[2], w2[3]], axis=0)         # (256,128) taps 2+3
    w2c = w2[4]                                           # (128,128) tap 4
    w3a = jnp.concatenate([w3[0], w3[1]], axis=0)         # (256, 64)
    w3b = jnp.concatenate([w3[2], w3[3]], axis=0)         # (256, 64)
    w3c = w3[4]                                           # (128, 64)
    b1r, b2r, b3r = b1.reshape(1, -1), b2.reshape(1, -1), b3.reshape(1, -1)
    bor = bo.reshape(3, 1)

    # ---- wrapper-side im2col for conv1 -------------------------------------
    xb = jnp.transpose(x, (1, 0, 2))                      # (B, T, 3)
    xp = jnp.pad(xb, ((0, 0), (PAD, PAD), (0, 0)))
    xim = jnp.concatenate([xp[:, k:k + T, :] for k in range(KSIZE)], axis=2)

    bb = batch_block if batch_block is not None else _pick_batch_block(B, T)
    assert B % bb == 0, "batch block must divide batch size"
    est = _vmem_estimate(bb, T)
    vmem_limit = int(min(max(32 << 20, 2 * est), 100 << 20))

    def full(a):
        nd = a.ndim
        return pl.BlockSpec(a.shape, lambda i, _nd=nd: (0,) * _nd)

    out = pl.pallas_call(
        _make_kernel(bb, T),
        out_shape=jax.ShapeDtypeStruct((B, 3, T), jnp.float32),
        grid_spec=pltpu.PrefetchScalarGridSpec(
            num_scalar_prefetch=0,
            grid=(B // bb,),
            in_specs=[
                pl.BlockSpec((bb, T, KSIZE * 3), lambda i: (i, 0, 0)),
                full(w1f), full(b1r),
                full(w2a), full(w2b), full(w2c), full(b2r),
                full(w3a), full(w3b), full(w3c), full(b3r),
                full(wo), full(bor),
            ],
            out_specs=pl.BlockSpec((bb, 3, T), lambda i: (i, 0, 0)),
            scratch_shapes=[pltpu.VMEM((2, DATA_OFF + T + TAIL, 2 * LANES),
                                       jnp.float32)],
        ),
        compiler_params=pltpu.CompilerParams(
            dimension_semantics=("parallel",),
            vmem_limit_bytes=vmem_limit),
    )(xim, w1f, b1r, w2a, w2b, w2c, b2r, w3a, w3b, w3c, b3r, wo, bor)

    return jnp.transpose(out, (2, 0, 1))                  # (T, B, 3)


def init_params(key):
    """Deterministic synthetic params (PyTorch-style uniform fan-in init)."""
    ks = jax.random.split(key, 8)

    def conv_layer(kw, kb, cin, cout):
        scale = 1.0 / jnp.sqrt(float(cin * KSIZE))
        w = jax.random.uniform(kw, (KSIZE, cin, cout), jnp.float32,
                               -scale, scale)
        b = jax.random.uniform(kb, (cout,), jnp.float32, -scale, scale)
        return w, b

    w1, b1 = conv_layer(ks[0], ks[1], 3, 128)
    w2, b2 = conv_layer(ks[2], ks[3], 128, 128)
    w3, b3 = conv_layer(ks[4], ks[5], 128, 64)
    scale = 1.0 / jnp.sqrt(64.0)
    wo = jax.random.uniform(ks[6], (3, 64), jnp.float32, -scale, scale)
    bo = jax.random.uniform(ks[7], (3,), jnp.float32, -scale, scale)
    return (w1, b1, w2, b2, w3, b3, wo, bo)


def reference_forward(x, params):
    """Plain-JAX reference (same math, different code path) for validation."""
    w1, b1, w2, b2, w3, b3, wo, bo = params

    def conv(h, w, b):                                    # h: (B, L, Cin)
        L = h.shape[1]
        hp = jnp.pad(h, ((0, 0), (PAD, PAD), (0, 0)))
        out = jnp.zeros((h.shape[0], L, w.shape[2]), jnp.float32) + b
        for k in range(KSIZE):
            out = out + jnp.einsum('blc,cd->bld', hp[:, k:k + L, :], w[k])
        return out

    hb = jnp.transpose(x, (1, 0, 2))                      # (B, T, 3)
    hb = _silu(conv(hb, w1, b1))
    hb = _silu(conv(hb, w2, b2))
    hb = _silu(conv(hb, w3, b3))
    out = jnp.einsum('blc,oc->blo', hb, wo) + bo
    return jnp.transpose(out, (1, 0, 2))                  # (T, B, 3)


if __name__ == "__main__":
    key = jax.random.PRNGKey(0)
    kp, kx1, kx2 = jax.random.split(key, 3)
    params = init_params(kp)

    # Test 1: small smoke test (bb=1 path).
    T1, B1 = 16, 2
    x1 = jax.random.normal(kx1, (T1, B1, 3), dtype=jnp.float32)
    out1 = cnn4_forward(x1, params)
    jax.block_until_ready(out1)
    assert out1.shape == (T1, B1, 3)
    err1 = float(jnp.max(jnp.abs(out1 - reference_forward(x1, params))))
    assert err1 < 1e-3, f"mismatch vs reference (test1): {err1}"

    # Test 2: odd T (non-multiple of 8) and B=8 -> exercises bb=4 unrolled
    # batch path, ping-pong staging reuse across batch elements, even grid.
    T2, B2 = 23, 8
    x2 = jax.random.normal(kx2, (T2, B2, 3), dtype=jnp.float32)
    out2 = cnn4_forward(x2, params)
    jax.block_until_ready(out2)
    assert out2.shape == (T2, B2, 3)
    err2 = float(jnp.max(jnp.abs(out2 - reference_forward(x2, params))))
    assert err2 < 1e-3, f"mismatch vs reference (test2): {err2}"

    print("KERNEL_OK")
</pallas_src>

<mosaic_0001>
module attributes {stable_mosaic.version = 11 : i64} {
  func.func @kernel(%arg0: i32, %arg1: memref<1x16x15xf32, #tpu.memory_space<vmem>>, %arg2: memref<15x128xf32, #tpu.memory_space<vmem>>, %arg3: memref<1x128xf32, #tpu.memory_space<vmem>>, %arg4: memref<256x128xf32, #tpu.memory_space<vmem>>, %arg5: memref<256x128xf32, #tpu.memory_space<vmem>>, %arg6: memref<128x128xf32, #tpu.memory_space<vmem>>, %arg7: memref<1x128xf32, #tpu.memory_space<vmem>>, %arg8: memref<256x64xf32, #tpu.memory_space<vmem>>, %arg9: memref<256x64xf32, #tpu.memory_space<vmem>>, %arg10: memref<128x64xf32, #tpu.memory_space<vmem>>, %arg11: memref<1x64xf32, #tpu.memory_space<vmem>>, %arg12: memref<3x64xf32, #tpu.memory_space<vmem>>, %arg13: memref<3x1xf32, #tpu.memory_space<vmem>>, %arg14: memref<1x3x16xf32, #tpu.memory_space<vmem>>, %arg15: memref<2x32x256xf32, #tpu.memory_space<vmem>>) attributes {dimension_semantics = [#tpu.dimension_semantics<parallel>], iteration_bounds = array<i64: 2>, scalar_prefetch = 0 : i64, scratch_operands = 1 : i64, tpu.core_type = #tpu.core_type<tc>, window_params = [{transform_indices = @transform_0, window_bounds = array<i64: 1, 16, 15>}, {pipeline_mode = #tpu.pipeline_mode<synchronous>, transform_indices = @transform_1, window_bounds = array<i64: 15, 128>}, {pipeline_mode = #tpu.pipeline_mode<synchronous>, transform_indices = @transform_2, window_bounds = array<i64: 1, 128>}, {pipeline_mode = #tpu.pipeline_mode<synchronous>, transform_indices = @transform_3, window_bounds = array<i64: 256, 128>}, {pipeline_mode = #tpu.pipeline_mode<synchronous>, transform_indices = @transform_4, window_bounds = array<i64: 256, 128>}, {pipeline_mode = #tpu.pipeline_mode<synchronous>, transform_indices = @transform_5, window_bounds = array<i64: 128, 128>}, {pipeline_mode = #tpu.pipeline_mode<synchronous>, transform_indices = @transform_6, window_bounds = array<i64: 1, 128>}, {pipeline_mode = #tpu.pipeline_mode<synchronous>, transform_indices = @transform_7, window_bounds = array<i64: 256, 64>}, {pipeline_mode = #tpu.pipeline_mode<synchronous>, transform_indices = @transform_8, window_bounds = array<i64: 256, 64>}, {pipeline_mode = #tpu.pipeline_mode<synchronous>, transform_indices = @transform_9, window_bounds = array<i64: 128, 64>}, {pipeline_mode = #tpu.pipeline_mode<synchronous>, transform_indices = @transform_10, window_bounds = array<i64: 1, 64>}, {pipeline_mode = #tpu.pipeline_mode<synchronous>, transform_indices = @transform_11, window_bounds = array<i64: 3, 64>}, {pipeline_mode = #tpu.pipeline_mode<synchronous>, transform_indices = @transform_12, window_bounds = array<i64: 3, 1>}, {transform_indices = @transform_13, window_bounds = array<i64: 1, 3, 16>}]} {
    %cst = arith.constant 0.000000e+00 : f32
    %0 = vector.broadcast %cst : f32 to vector<2x8x256xf32>
    %c0 = arith.constant 0 : index
    %c0_0 = arith.constant 0 : index
    %c0_1 = arith.constant 0 : index
    %1 = vector.load %arg15[%c0, %c0_0, %c0_1] : memref<2x32x256xf32, #tpu.memory_space<vmem>>, vector<2x8x256xf32>
    tpu.vector_store %arg15[%c0, %c0_0, %c0_1], %0 {strides = array<i32>} : memref<2x32x256xf32, #tpu.memory_space<vmem>>, vector<2x8x256xf32>,
    %cst_2 = arith.constant 0.000000e+00 : f32
    %2 = vector.broadcast %cst_2 : f32 to vector<2x8x256xf32>
    %c0_3 = arith.constant 0 : index
    %c24 = arith.constant 24 : index
    %c0_4 = arith.constant 0 : index
    %3 = vector.load %arg15[%c0_3, %c24, %c0_4] : memref<2x32x256xf32, #tpu.memory_space<vmem>>, vector<2x8x256xf32>
    tpu.vector_store %arg15[%c0_3, %c24, %c0_4], %2 {strides = array<i32>} : memref<2x32x256xf32, #tpu.memory_space<vmem>>, vector<2x8x256xf32>,
    %cst_5 = arith.constant 0.000000e+00 : f32
    %4 = vector.broadcast %cst_5 : f32 to vector<2x1x128xf32>
    %c0_6 = arith.constant 0 : index
    %c23 = arith.constant 23 : index
    %c128 = arith.constant 128 : index
    %5 = vector.load %arg15[%c0_6, %c23, %c128] : memref<2x32x256xf32, #tpu.memory_space<vmem>>, vector<2x1x128xf32>
    tpu.vector_store %arg15[%c0_6, %c23, %c128], %4 {strides = array<i32>} : memref<2x32x256xf32, #tpu.memory_space<vmem>>, vector<2x1x128xf32>,
    %c0_7 = arith.constant 0 : index
    %c0_8 = arith.constant 0 : index
    %c0_9 = arith.constant 0 : index
    %6 = vector.load %arg1[%c0_7, %c0_8, %c0_9] : memref<1x16x15xf32, #tpu.memory_space<vmem>>, vector<1x16x15xf32>
    %7 = vector.shape_cast %6 : vector<1x16x15xf32> to vector<16x15xf32>
    %c0_10 = arith.constant 0 : index
    %c0_11 = arith.constant 0 : index
    %8 = vector.load %arg2[%c0_10, %c0_11] : memref<15x128xf32, #tpu.memory_space<vmem>>, vector<15x128xf32>
    %cst_12 = arith.constant dense<0.000000e+00> : vector<16x128xf32>
    %9 = tpu.matmul %7, %8, %cst_12 {dimension_numbers = #tpu.dot_dimension_numbers<[1], [0], [0], [1], [0, 0, 1, 1], [], []>} : vector<16x15xf32>, vector<15x128xf32>, vector<16x128xf32> -> vector<16x128xf32>
    %c0_13 = arith.constant 0 : index
    %c0_14 = arith.constant 0 : index
    %10 = vector.load %arg3[%c0_13, %c0_14] : memref<1x128xf32, #tpu.memory_space<vmem>>, vector<1x128xf32>
    %11 = vector.broadcast %10 : vector<1x128xf32> to vector<16x128xf32>
    %12 = arith.addf %9, %11 : vector<16x128xf32>
    %cst_15 = arith.constant 5.000000e-01 : f32
    %13 = vector.broadcast %cst_15 : f32 to vector<16x128xf32>
    %14 = arith.mulf %13, %12 : vector<16x128xf32>
    %15 = math.tanh %14 : vector<16x128xf32>
    %cst_16 = arith.constant 5.000000e-01 : f32
    %16 = vector.broadcast %cst_16 : f32 to vector<16x128xf32>
    %17 = arith.mulf %16, %15 : vector<16x128xf32>
    %cst_17 = arith.constant 5.000000e-01 : f32
    %18 = vector.broadcast %cst_17 : f32 to vector<16x128xf32>
    %19 = arith.addf %17, %18 : vector<16x128xf32>
    %20 = arith.mulf %12, %19 : vector<16x128xf32>
    %c0_18 = arith.constant 0 : index
    %c8 = arith.constant 8 : index
    %c0_19 = arith.constant 0 : index
    %21 = vector.load %arg15[%c0_18, %c8, %c0_19] : memref<2x32x256xf32, #tpu.memory_space<vmem>>, vector<1x16x128xf32>
    %22 = vector.shape_cast %21 : vector<1x16x128xf32> to vector<16x128xf32>
    %23 = vector.shape_cast %20 : vector<16x128xf32> to vector<1x16x128xf32>
    tpu.vector_store %arg15[%c0_18, %c8, %c0_19], %23 {strides = array<i32>} : memref<2x32x256xf32, #tpu.memory_space<vmem>>, vector<1x16x128xf32>,
    %c0_20 = arith.constant 0 : index
    %c7 = arith.constant 7 : index
    %c128_21 = arith.constant 128 : index
    %24 = vector.load %arg15[%c0_20, %c7, %c128_21] : memref<2x32x256xf32, #tpu.memory_space<vmem>>, vector<1x16x128xf32>
    %25 = vector.shape_cast %24 : vector<1x16x128xf32> to vector<16x128xf32>
    %26 = vector.shape_cast %20 : vector<16x128xf32> to vector<1x16x128xf32>
    tpu.vector_store %arg15[%c0_20, %c7, %c128_21], %26 {strides = array<i32>} : memref<2x32x256xf32, #tpu.memory_space<vmem>>, vector<1x16x128xf32>,
    %c0_22 = arith.constant 0 : index
    %c6 = arith.constant 6 : index
    %c0_23 = arith.constant 0 : index
    %27 = vector.load %arg15[%c0_22, %c6, %c0_23] : memref<2x32x256xf32, #tpu.memory_space<vmem>>, vector<1x16x256xf32>
    %28 = vector.shape_cast %27 : vector<1x16x256xf32> to vector<16x256xf32>
    %c0_24 = arith.constant 0 : index
    %c0_25 = arith.constant 0 : index
    %29 = vector.load %arg4[%c0_24, %c0_25] : memref<256x128xf32, #tpu.memory_space<vmem>>, vector<256x128xf32>
    %cst_26 = arith.constant dense<0.000000e+00> : vector<16x128xf32>
    %30 = tpu.matmul %28, %29, %cst_26 {dimension_numbers = #tpu.dot_dimension_numbers<[1], [0], [0], [1], [0, 0, 1, 1], [], []>} : vector<16x256xf32>, vector<256x128xf32>, vector<16x128xf32> -> vector<16x128xf32>
    %c0_27 = arith.constant 0 : index
    %c8_28 = arith.constant 8 : index
    %c0_29 = arith.constant 0 : index
    %31 = vector.load %arg15[%c0_27, %c8_28, %c0_29] : memref<2x32x256xf32, #tpu.memory_space<vmem>>, vector<1x16x256xf32>
    %32 = vector.shape_cast %31 : vector<1x16x256xf32> to vector<16x256xf32>
    %c0_30 = arith.constant 0 : index
    %c0_31 = arith.constant 0 : index
    %33 = vector.load %arg5[%c0_30, %c0_31] : memref<256x128xf32, #tpu.memory_space<vmem>>, vector<256x128xf32>
    %cst_32 = arith.constant dense<0.000000e+00> : vector<16x128xf32>
    %34 = tpu.matmul %32, %33, %cst_32 {dimension_numbers = #tpu.dot_dimension_numbers<[1], [0], [0], [1], [0, 0, 1, 1], [], []>} : vector<16x256xf32>, vector<256x128xf32>, vector<16x128xf32> -> vector<16x128xf32>
    %35 = arith.addf %30, %34 : vector<16x128xf32>
    %c0_33 = arith.constant 0 : index
    %c10 = arith.constant 10 : index
    %c0_34 = arith.constant 0 : index
    %36 = vector.load %arg15[%c0_33, %c10, %c0_34] : memref<2x32x256xf32, #tpu.memory_space<vmem>>, vector<1x16x128xf32>
    %37 = vector.shape_cast %36 : vector<1x16x128xf32> to vector<16x128xf32>
    %c0_35 = arith.constant 0 : index
    %c0_36 = arith.constant 0 : index
    %38 = vector.load %arg6[%c0_35, %c0_36] : memref<128x128xf32, #tpu.memory_space<vmem>>, vector<128x128xf32>
    %cst_37 = arith.constant dense<0.000000e+00> : vector<16x128xf32>
    %39 = tpu.matmul %37, %38, %cst_37 {dimension_numbers = #tpu.dot_dimension_numbers<[1], [0], [0], [1], [0, 0, 1, 1], [], []>} : vector<16x128xf32>, vector<128x128xf32>, vector<16x128xf32> -> vector<16x128xf32>
    %40 = arith.addf %35, %39 : vector<16x128xf32>
    %c0_38 = arith.constant 0 : index
    %c0_39 = arith.constant 0 : index
    %41 = vector.load %arg7[%c0_38, %c0_39] : memref<1x128xf32, #tpu.memory_space<vmem>>, vector<1x128xf32>
    %42 = vector.broadcast %41 : vector<1x128xf32> to vector<16x128xf32>
    %43 = arith.addf %40, %42 : vector<16x128xf32>
    %cst_40 = arith.constant 5.000000e-01 : f32
    %44 = vector.broadcast %cst_40 : f32 to vector<16x128xf32>
    %45 = arith.mulf %44, %43 : vector<16x128xf32>
    %46 = math.tanh %45 : vector<16x128xf32>
    %cst_41 = arith.constant 5.000000e-01 : f32
    %47 = vector.broadcast %cst_41 : f32 to vector<16x128xf32>
    %48 = arith.mulf %47, %46 : vector<16x128xf32>
    %cst_42 = arith.constant 5.000000e-01 : f32
    %49 = vector.broadcast %cst_42 : f32 to vector<16x128xf32>
    %50 = arith.addf %48, %49 : vector<16x128xf32>
    %51 = arith.mulf %43, %50 : vector<16x128xf32>
    %c0_43 = arith.constant 0 : index
    %c8_44 = arith.constant 8 : index
    %c0_45 = arith.constant 0 : index
    %52 = vector.load %arg15[%c0_43, %c8_44, %c0_45] : memref<2x32x256xf32, #tpu.memory_space<vmem>>, vector<1x16x128xf32>
    %53 = vector.shape_cast %52 : vector<1x16x128xf32> to vector<16x128xf32>
    %54 = vector.shape_cast %51 : vector<16x128xf32> to vector<1x16x128xf32>
    tpu.vector_store %arg15[%c0_43, %c8_44, %c0_45], %54 {strides = array<i32>} : memref<2x32x256xf32, #tpu.memory_space<vmem>>, vector<1x16x128xf32>,
    %c0_46 = arith.constant 0 : index
    %c7_47 = arith.constant 7 : index
    %c128_48 = arith.constant 128 : index
    %55 = vector.load %arg15[%c0_46, %c7_47, %c128_48] : memref<2x32x256xf32, #tpu.memory_space<vmem>>, vector<1x16x128xf32>
    %56 = vector.shape_cast %55 : vector<1x16x128xf32> to vector<16x128xf32>
    %57 = vector.shape_cast %51 : vector<16x128xf32> to vector<1x16x128xf32>
    tpu.vector_store %arg15[%c0_46, %c7_47, %c128_48], %57 {strides = array<i32>} : memref<2x32x256xf32, #tpu.memory_space<vmem>>, vector<1x16x128xf32>,
    %c0_49 = arith.constant 0 : index
    %c6_50 = arith.constant 6 : index
    %c0_51 = arith.constant 0 : index
    %58 = vector.load %arg15[%c0_49, %c6_50, %c0_51] : memref<2x32x256xf32, #tpu.memory_space<vmem>>, vector<1x16x256xf32>
    %59 = vector.shape_cast %58 : vector<1x16x256xf32> to vector<16x256xf32>
    %c0_52 = arith.constant 0 : index
    %c0_53 = arith.constant 0 : index
    %60 = vector.load %arg8[%c0_52, %c0_53] : memref<256x64xf32, #tpu.memory_space<vmem>>, vector<256x64xf32>
    %cst_54 = arith.constant dense<0.000000e+00> : vector<16x64xf32>
    %61 = tpu.matmul %59, %60, %cst_54 {dimension_numbers = #tpu.dot_dimension_numbers<[1], [0], [0], [1], [0, 0, 1, 1], [], []>} : vector<16x256xf32>, vector<256x64xf32>, vector<16x64xf32> -> vector<16x64xf32>
    %c0_55 = arith.constant 0 : index
    %c8_56 = arith.constant 8 : index
    %c0_57 = arith.constant 0 : index
    %62 = vector.load %arg15[%c0_55, %c8_56, %c0_57] : memref<2x32x256xf32, #tpu.memory_space<vmem>>, vector<1x16x256xf32>
    %63 = vector.shape_cast %62 : vector<1x16x256xf32> to vector<16x256xf32>
    %c0_58 = arith.constant 0 : index
    %c0_59 = arith.constant 0 : index
    %64 = vector.load %arg9[%c0_58, %c0_59] : memref<256x64xf32, #tpu.memory_space<vmem>>, vector<256x64xf32>
    %cst_60 = arith.constant dense<0.000000e+00> : vector<16x64xf32>
    %65 = tpu.matmul %63, %64, %cst_60 {dimension_numbers = #tpu.dot_dimension_numbers<[1], [0], [0], [1], [0, 0, 1, 1], [], []>} : vector<16x256xf32>, vector<256x64xf32>, vector<16x64xf32> -> vector<16x64xf32>
    %66 = arith.addf %61, %65 : vector<16x64xf32>
    %c0_61 = arith.constant 0 : index
    %c10_62 = arith.constant 10 : index
    %c0_63 = arith.constant 0 : index
    %67 = vector.load %arg15[%c0_61, %c10_62, %c0_63] : memref<2x32x256xf32, #tpu.memory_space<vmem>>, vector<1x16x128xf32>
    %68 = vector.shape_cast %67 : vector<1x16x128xf32> to vector<16x128xf32>
    %c0_64 = arith.constant 0 : index
    %c0_65 = arith.constant 0 : index
    %69 = vector.load %arg10[%c0_64, %c0_65] : memref<128x64xf32, #tpu.memory_space<vmem>>, vector<128x64xf32>
    %cst_66 = arith.constant dense<0.000000e+00> : vector<16x64xf32>
    %70 = tpu.matmul %68, %69, %cst_66 {dimension_numbers = #tpu.dot_dimension_numbers<[1], [0], [0], [1], [0, 0, 1, 1], [], []>} : vector<16x128xf32>, vector<128x64xf32>, vector<16x64xf32> -> vector<16x64xf32>
    %71 = arith.addf %66, %70 : vector<16x64xf32>
    %c0_67 = arith.constant 0 : index
    %c0_68 = arith.constant 0 : index
    %72 = vector.load %arg11[%c0_67, %c0_68] : memref<1x64xf32, #tpu.memory_space<vmem>>, vector<1x64xf32>
    %73 = vector.broadcast %72 : vector<1x64xf32> to vector<16x64xf32>
    %74 = arith.addf %71, %73 : vector<16x64xf32>
    %cst_69 = arith.constant 5.000000e-01 : f32
    %75 = vector.broadcast %cst_69 : f32 to vector<16x64xf32>
    %76 = arith.mulf %75, %74 : vector<16x64xf32>
    %77 = math.tanh %76 : vector<16x64xf32>
    %cst_70 = arith.constant 5.000000e-01 : f32
    %78 = vector.broadcast %cst_70 : f32 to vector<16x64xf32>
    %79 = arith.mulf %78, %77 : vector<16x64xf32>
    %cst_71 = arith.constant 5.000000e-01 : f32
    %80 = vector.broadcast %cst_71 : f32 to vector<16x64xf32>
    %81 = arith.addf %79, %80 : vector<16x64xf32>
    %82 = arith.mulf %74, %81 : vector<16x64xf32>
    %c0_72 = arith.constant 0 : index
    %c0_73 = arith.constant 0 : index
    %83 = vector.load %arg12[%c0_72, %c0_73] : memref<3x64xf32, #tpu.memory_space<vmem>>, vector<3x64xf32>
    %cst_74 = arith.constant dense<0.000000e+00> : vector<3x16xf32>
    %84 = tpu.matmul %83, %82, %cst_74 {dimension_numbers = #tpu.dot_dimension_numbers<[1], [1], [0], [0], [0, 0, 1, 0], [], []>} : vector<3x64xf32>, vector<16x64xf32>, vector<3x16xf32> -> vector<3x16xf32>
    %c0_75 = arith.constant 0 : index
    %c0_76 = arith.constant 0 : index
    %85 = vector.load %arg13[%c0_75, %c0_76] : memref<3x1xf32, #tpu.memory_space<vmem>>, vector<3x1xf32>
    %86 = vector.broadcast %85 : vector<3x1xf32> to vector<3x16xf32>
    %87 = arith.addf %84, %86 : vector<3x16xf32>
    %c0_77 = arith.constant 0 : index
    %c0_78 = arith.constant 0 : index
    %c0_79 = arith.constant 0 : index
    %88 = vector.load %arg14[%c0_77, %c0_78, %c0_79] : memref<1x3x16xf32, #tpu.memory_space<vmem>>, vector<1x3x16xf32>
    %89 = vector.shape_cast %88 : vector<1x3x16xf32> to vector<3x16xf32>
    %90 = vector.shape_cast %87 : vector<3x16xf32> to vector<1x3x16xf32>
    tpu.vector_store %arg14[%c0_77, %c0_78, %c0_79], %90 {strides = array<i32>} : memref<1x3x16xf32, #tpu.memory_space<vmem>>, vector<1x3x16xf32>,
    return
  }
  func.func @transform_0(%arg0: i32) -> (i32, i32, i32) {
    %c0_i32 = arith.constant 0 : i32
    %c0_i32_0 = arith.constant 0 : i32
    %c0_i32_1 = arith.constant 0 : i32
    return %arg0, %c0_i32, %c0_i32_0 : i32, i32, i32
  }
  func.func @transform_1(%arg0: i32) -> (i32, i32) {
    %c0_i32 = arith.constant 0 : i32
    %c0_i32_0 = arith.constant 0 : i32
    %c0_i32_1 = arith.constant 0 : i32
    return %c0_i32, %c0_i32_0 : i32, i32
  }
  func.func @transform_2(%arg0: i32) -> (i32, i32) {
    %c0_i32 = arith.constant 0 : i32
    %c0_i32_0 = arith.constant 0 : i32
    %c0_i32_1 = arith.constant 0 : i32
    return %c0_i32, %c0_i32_0 : i32, i32
  }
  func.func @transform_3(%arg0: i32) -> (i32, i32) {
    %c0_i32 = arith.constant 0 : i32
    %c0_i32_0 = arith.constant 0 : i32
    %c0_i32_1 = arith.constant 0 : i32
    return %c0_i32, %c0_i32_0 : i32, i32
  }
  func.func @transform_4(%arg0: i32) -> (i32, i32) {
    %c0_i32 = arith.constant 0 : i32
    %c0_i32_0 = arith.constant 0 : i32
    %c0_i32_1 = arith.constant 0 : i32
    return %c0_i32, %c0_i32_0 : i32, i32
  }
  func.func @transform_5(%arg0: i32) -> (i32, i32) {
    %c0_i32 = arith.constant 0 : i32
    %c0_i32_0 = arith.constant 0 : i32
    %c0_i32_1 = arith.constant 0 : i32
    return %c0_i32, %c0_i32_0 : i32, i32
  }
  func.func @transform_6(%arg0: i32) -> (i32, i32) {
    %c0_i32 = arith.constant 0 : i32
    %c0_i32_0 = arith.constant 0 : i32
    %c0_i32_1 = arith.constant 0 : i32
    return %c0_i32, %c0_i32_0 : i32, i32
  }
  func.func @transform_7(%arg0: i32) -> (i32, i32) {
    %c0_i32 = arith.constant 0 : i32
    %c0_i32_0 = arith.constant 0 : i32
    %c0_i32_1 = arith.constant 0 : i32
    return %c0_i32, %c0_i32_0 : i32, i32
  }
  func.func @transform_8(%arg0: i32) -> (i32, i32) {
    %c0_i32 = arith.constant 0 : i32
    %c0_i32_0 = arith.constant 0 : i32
    %c0_i32_1 = arith.constant 0 : i32
    return %c0_i32, %c0_i32_0 : i32, i32
  }
  func.func @transform_9(%arg0: i32) -> (i32, i32) {
    %c0_i32 = arith.constant 0 : i32
    %c0_i32_0 = arith.constant 0 : i32
    %c0_i32_1 = arith.constant 0 : i32
    return %c0_i32, %c0_i32_0 : i32, i32
  }
  func.func @transform_10(%arg0: i32) -> (i32, i32) {
    %c0_i32 = arith.constant 0 : i32
    %c0_i32_0 = arith.constant 0 : i32
    %c0_i32_1 = arith.constant 0 : i32
    return %c0_i32, %c0_i32_0 : i32, i32
  }
  func.func @transform_11(%arg0: i32) -> (i32, i32) {
    %c0_i32 = arith.constant 0 : i32
    %c0_i32_0 = arith.constant 0 : i32
    %c0_i32_1 = arith.constant 0 : i32
    return %c0_i32, %c0_i32_0 : i32, i32
  }
  func.func @transform_12(%arg0: i32) -> (i32, i32) {
    %c0_i32 = arith.constant 0 : i32
    %c0_i32_0 = arith.constant 0 : i32
    %c0_i32_1 = arith.constant 0 : i32
    return %c0_i32, %c0_i32_0 : i32, i32
  }
  func.func @transform_13(%arg0: i32) -> (i32, i32, i32) {
    %c0_i32 = arith.constant 0 : i32
    %c0_i32_0 = arith.constant 0 : i32
    %c0_i32_1 = arith.constant 0 : i32
    return %arg0, %c0_i32, %c0_i32_0 : i32, i32, i32
  }
}

</mosaic_0001>

<bundles_post_ra>
// kernel: tpu_custom_call.1
= control target key start
LH: loop header
LB: loop body
LE: loop exit
PB: predicated region body
PF: predicated region fallthrough
CT: control target
= control target key end

     0   :  { %s2070_s25 = smov 0   ;;  %s2628_s0 = inlined_call_operand.vmem [shape: f32[2,16,15], index: 0, kind: input, shape index: {}]   ;;  %s2629_s1 = inlined_call_operand.vmem [shape: f32[15,128], index: 1, kind: input, shape index: {}]   ;;  %s2630_s2 = inlined_call_operand.vmem [shape: f32[1,128], index: 2, kind: input, shape index: {}]   ;;  %s2631_s3 = inlined_call_operand.vmem [shape: f32[256,128], index: 3, kind: input, shape index: {}]   ;;  %s2632_s4 = inlined_call_operand.vmem [shape: f32[256,128], index: 4, kind: input, shape index: {}]   ;;  %s2633_s5 = inlined_call_operand.vmem [shape: f32[128,128], index: 5, kind: input, shape index: {}]   ;;  %s2634_s6 = inlined_call_operand.vmem [shape: f32[1,128], index: 6, kind: input, shape index: {}]   ;;  %s2635_s7 = inlined_call_operand.vmem [shape: f32[256,64], index: 7, kind: input, shape index: {}]   ;;  %s2636_s8 = inlined_call_operand.vmem [shape: f32[256,64], index: 8, kind: input, shape index: {}]   ;;  %s2637_s9 = inlined_call_operand.vmem [shape: f32[128,64], index: 9, kind: input, shape index: {}]   ;;  %s2638_s10 = inlined_call_operand.vmem [shape: f32[1,64], index: 10, kind: input, shape index: {}]   ;;  %s2639_s11 = inlined_call_operand.vmem [shape: f32[3,64], index: 11, kind: input, shape index: {}]   ;;  %s2640_s12 = inlined_call_operand.vmem [shape: f32[3,1], index: 12, kind: input, shape index: {}]   ;;  %s2641_s13 = inlined_call_operand.vmem [shape: f32[2,3,16], index: 13, kind: output, shape index: {}]  }
   0x1 LB: > { %s1460_s26 = sadd.s32 4294967295, %s1993_s25   ;;  %p1464_p0 = scmp.ge.s32.totalorder %s1993_s25, 1  ;;  %s1993_s25 = sphi %s2070_s25, %s23_s25  }
   0x2   : > { %p387_p1 = scmp.lt.s32.totalorder %s1993_s25, 3 }
   0x4   : > { %p388_p2 = pnand %p1464_p0, %p387_p1 }
   0x5   : > { %v451_v0 = vld [vmem:[%s2629_s1] sm:$0xff] (!%p388_p2)  ;;  %v452_v1 = vld [vmem:[%s2629_s1 + $0x8] sm:$0x7f] (!%p388_p2)  ;;  %vm467_vm0 = vcmask (!%p388_p2), 1046528   ;;  %p430_p3 = scmp.lt.s32.totalorder (!%p388_p2), %s1460_s26, 1  ;;  %vm1995_vm1 = vmmov (!%p388_p2), 1  }
   0x6   : > { %391 = sbr.rel (%p388_p2) target bundleno = 1020 (0x3fc), region = 72  ;;  %v1759_v2 = vpack.c.bf16 (!%p388_p2), %v452_v1, %v451_v0  ;;  %vm1760_vm2 = vmpackc.low (!%p388_p2), %vm467_vm0, %vm1995_vm1  ;;  %vm460_vm3 = vcmask (!%p388_p2), 121856   ;;  %v625_v5 = vld [vmem:[%s2632_s4 + $0x80] sm:$0xff] (!%p388_p2)  ;;  %v626_v6 = vld [vmem:[%s2632_s4 + $0x88] sm:$0xff] (!%p388_p2)  ;;  %v1996_v59 = vmov (!%p388_p2), 0.0   ;;  %vm834_vm4 = vcmask (!%p388_p2), 1045504  }
   0x7   : > { %v1765_v7 = vpack.c.bf16 (!%p388_p2), %v626_v6, %v625_v5  ;;  %v609_v8 = vld [vmem:[%s2632_s4] sm:$0xff] (!%p388_p2)  ;;  %v610_v9 = vld [vmem:[%s2632_s4 + $0x8] sm:$0xff] (!%p388_p2)  ;;  %v627_v11 = vld [vmem:[%s2632_s4 + $0x90] sm:$0xff] (!%p388_p2)  ;;  %440 = vst [vmem:[#allocation2 + $0x8] sm:$0xff] (!%p388_p2), %v1996_v59  ;;  %vm722_vm5 = vcmask (!%p388_p2), 1041408   ;;  %vm1998_vm6 = vmmov (!%p388_p2), 0  }
   0x8   : > { %1761 = vmatprep.subr.msk.bf16.mxu0 (!%p388_p2), %vm1760_vm2, %v1759_v2  ;;  %v1767_v10 = vpack.c.bf16 (!%p388_p2), %v610_v9, %v609_v8  ;;  %v628_v12 = vld [vmem:[%s2632_s4 + $0x98] sm:$0xff] (!%p388_p2)  ;;  %v611_v14 = vld [vmem:[%s2632_s4 + $0x10] sm:$0xff] (!%p388_p2)  ;;  %v629_v17 = vld [vmem:[%s2632_s4 + $0xa0] sm:$0xff] (!%p388_p2)  ;;  %439 = vst [vmem:[#allocation2] sm:$0xff] (!%p388_p2), %v1996_v59  ;;  %vm1325_vm7 = vcmask (!%p388_p2), 523264   ;;  %vm1405_vm9 = vcmask (!%p388_p2), 124928  }
   0x9   : > { %1764 = vmatpush3.bf16.msk.msra.mxu0 (!%p388_p2), %vm1760_vm2, %v1759_v2  ;;  %1766 = vmatprep.subr.bf16.mxu1 (!%p388_p2), %v1765_v7  ;;  %v1769_v13 = vpack.c.bf16 (!%p388_p2), %v628_v12, %v627_v11  ;;  %v612_v15 = vld [vmem:[%s2632_s4 + $0x18] sm:$0xff] (!%p388_p2)  ;;  %v630_v18 = vld [vmem:[%s2632_s4 + $0xa8] sm:$0xff] (!%p388_p2)  ;;  %v613_v20 = vld [vmem:[%s2632_s4 + $0x20] sm:$0xff] (!%p388_p2)  ;;  %443 = vst [vmem:[#allocation2 + $0x30] sm:$0xff] (!%p388_p2), %v1996_v59 }
   0xa   : > { %1768 = vmatpush3.bf16.msra.mxu1 (!%p388_p2), %v1767_v10  ;;  %v1771_v16 = vpack.c.bf16 (!%p388_p2), %v612_v15, %v611_v14  ;;  %v1773_v19 = vpack.c.bf16 (!%p388_p2), %v630_v18, %v629_v17  ;;  %v614_v21 = vld [vmem:[%s2632_s4 + $0x28] sm:$0xff] (!%p388_p2)  ;;  %v591_v23 = vld [vmem:[%s2631_s3 + $0x80] sm:$0xff] (!%p388_p2)  ;;  %v631_v28 = vld [vmem:[%s2632_s4 + $0xb0] sm:$0xff] (!%p388_p2)  ;;  %447 = vst [vmem:[#allocation2 + $0x2f] sm:$0x1] (!%p388_p2), %v1996_v59 }
   0xb   : > { %1770 = vmatprep.subr.bf16.mxu1 (!%p388_p2), %v1769_v13  ;;  %v1775_v22 = vpack.c.bf16 (!%p388_p2), %v614_v21, %v613_v20  ;;  %v592_v24 = vld [vmem:[%s2631_s3 + $0x88] sm:$0xff] (!%p388_p2)  ;;  %v575_v26 = vld [vmem:[%s2631_s3] sm:$0xff] (!%p388_p2)  ;;  %v632_v30 = vld [vmem:[%s2632_s4 + $0xb8] sm:$0xff] (!%p388_p2) }
   0xc   : > { %v1797_v25 = vpack.c.bf16 (!%p388_p2), %v592_v24, %v591_v23  ;;  %v576_v27 = vld [vmem:[%s2631_s3 + $0x8] sm:$0xff] (!%p388_p2)  ;;  %v615_v31 = vld [vmem:[%s2632_s4 + $0x30] sm:$0xff] (!%p388_p2)  ;;  %v616_v32 = vld [vmem:[%s2632_s4 + $0x38] sm:$0xff] (!%p388_p2)  ;;  %v1777_v33 = vpack.c.bf16 (!%p388_p2), %v632_v30, %v631_v28 }
   0xd   : > { %s2643_s26 = smov (!%p430_p3, %s1460_s26), 1  ;;  %v1799_v29 = vpack.c.bf16 %v576_v27, %v575_v26  ;;  %v1779_v34 = vpack.c.bf16 %v616_v32, %v615_v31  ;;  %v593_v35 = vld [vmem:[%s2631_s3 + $0x90] sm:$0xff]  ;;  %v594_v36 = vld [vmem:[%s2631_s3 + $0x98] sm:$0xff]  ;;  %v633_v40 = vld [vmem:[%s2632_s4 + $0xc0] sm:$0xff] }
   0xe   : > { %s1479_s14 = sshll.u32 %s2643_s26, 4  ;;  %1772 = vmatpush3.bf16.msra.mxu1 %v1771_v16  ;;  %1798 = vmatprep.subr.bf16.mxu0 %v1797_v25  ;;  %v1801_v37 = vpack.c.bf16 %v594_v36, %v593_v35  ;;  %v577_v38 = vld [vmem:[%s2631_s3 + $0x10] sm:$0xff]  ;;  %v578_v39 = vld [vmem:[%s2631_s3 + $0x18] sm:$0xff]  ;;  %v634_v42 = vld [vmem:[%s2632_s4 + $0xc8] sm:$0xff]  ;;  %s1467_s18 = sshll.u32 %s2643_s26, 2 }
   0xf   : > { %s434_s17 = scalar_lea.vmem %s2628_s0, %s1479_s14  ;;  %1774 = vmatprep.subr.bf16.mxu1 %v1773_v19  ;;  %v1803_v41 = vpack.c.bf16 %v578_v39, %v577_v38  ;;  %v617_v43 = vld [vmem:[%s2632_s4 + $0x40] sm:$0xff]  ;;  %v618_v44 = vld [vmem:[%s2632_s4 + $0x48] sm:$0xff]  ;;  %v1781_v45 = vpack.c.bf16 %v634_v42, %v633_v40  ;;  %v635_v52 = vld [vmem:[%s2632_s4 + $0xd0] sm:$0xff]  ;;  %s438_s21 = scalar_lea.vmem %s2641_s13, %s1467_s18 }
  0x10   : > { %v449_v3 = vld [vmem:[%s434_s17] sm:$0xff]  ;;  %v450_v4 = vld [vmem:[%s434_s17 + $0x8] sm:$0xff]  ;;  %v1783_v46 = vpack.c.bf16 %v618_v44, %v617_v43  ;;  %v636_v54 = vld [vmem:[%s2632_s4 + $0xd8] sm:$0xff] }
  0x11   : > { %1679 = vmatprep.mubr.msk.f32.mxu0 %vm460_vm3, %v449_v3  ;;  %v595_v47 = vld [vmem:[%s2631_s3 + $0xa0] sm:$0xff]  ;;  %v596_v48 = vld [vmem:[%s2631_s3 + $0xa8] sm:$0xff]  ;;  %v619_v55 = vld [vmem:[%s2632_s4 + $0x50] sm:$0xff]  ;;  %v1785_v57 = vpack.c.bf16 %v636_v54, %v635_v52 }
  0x12   : > { %1680 = vmatmul.mubr.msk.f32.vlgmr.msra.gmra.mrb[0].mxu0 %vm460_vm3, %v450_v4  ;;  %1776 = vmatpush3.bf16.msra.mxu1 %v1775_v22  ;;  %v1805_v49 = vpack.c.bf16 %v596_v48, %v595_v47  ;;  %v579_v50 = vld [vmem:[%s2631_s3 + $0x20] sm:$0xff]  ;;  %v580_v51 = vld [vmem:[%s2631_s3 + $0x28] sm:$0xff]  ;;  %v620_v56 = vld [vmem:[%s2632_s4 + $0x58] sm:$0xff] }
  0x13   : > { %1800 = vmatpush3.bf16.msra.mxu0 %v1799_v29  ;;  %1778 = vmatprep.subr.bf16.mxu1 %v1777_v33  ;;  %v1807_v53 = vpack.c.bf16 %v580_v51, %v579_v50  ;;  %v1787_v58 = vpack.c.bf16 %v620_v56, %v619_v55  ;;  %v597_v60 = vld [vmem:[%s2631_s3 + $0xb0] sm:$0xff]  ;;  %v598_v61 = vld [vmem:[%s2631_s3 + $0xb8] sm:$0xff]  ;;  %v637_v1 = vld [vmem:[%s2632_s4 + $0xe0] sm:$0xff] }
  0x14   : > { %1802 = vmatprep.subr.bf16.mxu0 %v1801_v37  ;;  %v1809_v62 = vpack.c.bf16 %v598_v61, %v597_v60  ;;  %v581_v63 = vld [vmem:[%s2631_s3 + $0x30] sm:$0xff]  ;;  %v582_v0 = vld [vmem:[%s2631_s3 + $0x38] sm:$0xff]  ;;  %v638_v3 = vld [vmem:[%s2632_s4 + $0xe8] sm:$0xff] }
  0x15   : > { %v1811_v2 = vpack.c.bf16 %v582_v0, %v581_v63  ;;  %v621_v4 = vld [vmem:[%s2632_s4 + $0x60] sm:$0xff]  ;;  %v622_v5 = vld [vmem:[%s2632_s4 + $0x68] sm:$0xff]  ;;  %v1789_v6 = vpack.c.bf16 %v638_v3, %v637_v1  ;;  %v639_v13 = vld [vmem:[%s2632_s4 + $0xf0] sm:$0xff] }
  0x16   : > { %1780 = vmatpush3.bf16.msra.mxu1 %v1779_v34  ;;  %v1791_v7 = vpack.c.bf16 %v622_v5, %v621_v4  ;;  %v599_v8 = vld [vmem:[%s2631_s3 + $0xc0] sm:$0xff]  ;;  %v600_v9 = vld [vmem:[%s2631_s3 + $0xc8] sm:$0xff]  ;;  %v640_v15 = vld [vmem:[%s2632_s4 + $0xf8] sm:$0xff] }
  0x17   : > { %1804 = vmatpush3.bf16.msra.mxu0 %v1803_v41  ;;  %1782 = vmatprep.subr.bf16.mxu1 %v1781_v45  ;;  %v1813_v10 = vpack.c.bf16 %v600_v9, %v599_v8  ;;  %v583_v11 = vld [vmem:[%s2631_s3 + $0x40] sm:$0xff]  ;;  %v584_v12 = vld [vmem:[%s2631_s3 + $0x48] sm:$0xff]  ;;  %v623_v16 = vld [vmem:[%s2632_s4 + $0x70] sm:$0xff]  ;;  %v1793_v18 = vpack.c.bf16 %v640_v15, %v639_v13 }
  0x18   : > { %1806 = vmatprep.subr.bf16.mxu0 %v1805_v49  ;;  %v1815_v14 = vpack.c.bf16 %v584_v12, %v583_v11  ;;  %v624_v17 = vld [vmem:[%s2632_s4 + $0x78] sm:$0xff]  ;;  %v601_v20 = vld [vmem:[%s2631_s3 + $0xd0] sm:$0xff]  ;;  %v815_v25 = vld [vmem:[%s2633_s5] sm:$0xff] }
  0x19   : > { %v1795_v19 = vpack.c.bf16 %v624_v17, %v623_v16  ;;  %v602_v21 = vld [vmem:[%s2631_s3 + $0xd8] sm:$0xff]  ;;  %v585_v23 = vld [vmem:[%s2631_s3 + $0x50] sm:$0xff]  ;;  %v816_v27 = vld [vmem:[%s2633_s5 + $0x8] sm:$0xff] }
  0x1a   : > { %1784 = vmatpush3.bf16.msra.mxu1 %v1783_v46  ;;  %v1817_v22 = vpack.c.bf16 %v602_v21, %v601_v20  ;;  %v586_v24 = vld [vmem:[%s2631_s3 + $0x58] sm:$0xff]  ;;  %v603_v28 = vld [vmem:[%s2631_s3 + $0xe0] sm:$0xff]  ;;  %v604_v29 = vld [vmem:[%s2631_s3 + $0xe8] sm:$0xff]  ;;  %v1829_v31 = vpack.c.bf16 %v816_v27, %v815_v25 }
  0x1b   : > { %1808 = vmatpush3.bf16.msra.mxu0 %v1807_v53  ;;  %1786 = vmatprep.subr.bf16.mxu1 %v1785_v57  ;;  %v1819_v26 = vpack.c.bf16 %v586_v24, %v585_v23  ;;  %v587_v30 = vld [vmem:[%s2631_s3 + $0x60] sm:$0xff]  ;;  %v1821_v32 = vpack.c.bf16 %v604_v29, %v603_v28  ;;  %v588_v33 = vld [vmem:[%s2631_s3 + $0x68] sm:$0xff]  ;;  %v605_v34 = vld [vmem:[%s2631_s3 + $0xf0] sm:$0xff] }
  0x1c   : > { %1810 = vmatprep.subr.bf16.mxu0 %v1809_v62  ;;  %v606_v35 = vld [vmem:[%s2631_s3 + $0xf8] sm:$0xff]  ;;  %v1823_v36 = vpack.c.bf16 %v588_v33, %v587_v30  ;;  %v589_v38 = vld [vmem:[%s2631_s3 + $0x70] sm:$0xff]  ;;  %v1468_v41 = vld [vmem:[%s2630_s2] ss:$0 sm:$0xff] }
  0x1d   : > { %v1825_v37 = vpack.c.bf16 %v606_v35, %v605_v34  ;;  %v590_v39 = vld [vmem:[%s2631_s3 + $0x78] sm:$0xff]  ;;  %v817_v57 = vld [vmem:[%s2633_s5 + $0x10] sm:$0xff]  ;;  %v819_v63 = vld [vmem:[%s2633_s5 + $0x20] sm:$0xff] }
  0x1e   : > { %1788 = vmatpush3.bf16.msra.mxu1 %v1787_v58  ;;  %v1827_v40 = vpack.c.bf16 %v590_v39, %v589_v38  ;;  %v818_v58 = vld [vmem:[%s2633_s5 + $0x18] sm:$0xff]  ;;  %v820_v0 = vld [vmem:[%s2633_s5 + $0x28] sm:$0xff]  ;;  %v569_v1 = vld [vmem:[#allocation2] sm:$0xc0] }
  0x1f   : > { %1812 = vmatpush3.bf16.msra.mxu0 %v1811_v2  ;;  %1790 = vmatprep.subr.bf16.mxu1 %v1789_v6  ;;  %v1833_v62 = vpack.c.bf16 %v818_v58, %v817_v57  ;;  %v1837_v2 = vpack.c.bf16 %v820_v0, %v819_v63  ;;  %v821_v3 = vld [vmem:[%s2633_s5 + $0x30] sm:$0xff]  ;;  %v822_v4 = vld [vmem:[%s2633_s5 + $0x38] sm:$0xff]  ;;  %v723_v12 = vrot.slane %v569_v1, 6  ;;  %v824_v20 = vld [vmem:[%s2633_s5 + $0x48] sm:$0xff] }
  0x20   : > { %1814 = vmatprep.subr.bf16.mxu0 %v1813_v10  ;;  %v1841_v13 = vpack.c.bf16 %v822_v4, %v821_v3  ;;  %v826_v27 = vld [vmem:[%s2633_s5 + $0x58] sm:$0xff]  ;;  %v827_v30 = vld [vmem:[%s2633_s5 + $0x60] sm:$0xff]  ;;  %v829_v33 = vld [vmem:[%s2633_s5 + $0x70] sm:$0xff] }
  0x21   : > { %v830_v34 = vld [vmem:[%s2633_s5 + $0x78] sm:$0xff]  ;;  %v1007_v39 = vld [vmem:[%s2636_s8 + $0x80] sm:$0xff]  ;;  %v974_v58 = vld [vmem:[%s2635_s7 + $0x88] sm:$0xff] }
  0x22   : > { %1792 = vmatpush3.bf16.msra.mxu1 %v1791_v7  ;;  %v1857_v35 = vpack.c.bf16 %v830_v34, %v829_v33  ;;  %v973_v57 = vld [vmem:[%s2635_s7 + $0x80] sm:$0xff]  ;;  %v1013_v63 = vld [vmem:[%s2636_s8 + $0xb0] sm:$0xff]  ;;  %v1014_v1 = vld [vmem:[%s2636_s8 + $0xb8] sm:$0xff] }
  0x23   : > { %1816 = vmatpush3.bf16.msra.mxu0 %v1815_v14  ;;  %1794 = vmatprep.subr.bf16.mxu1 %v1793_v18  ;;  %v998_v3 = vld [vmem:[%s2636_s8 + $0x38] sm:$0xff]  ;;  %v1873_v4 = vpack.c.bf16 %v1014_v1, %v1013_v63  ;;  %v963_v33 = vld [vmem:[%s2635_s7 + $0x30] sm:$0xff]  ;;  %v986_v1 = vld [vmem:[%s2635_s7 + $0xe8] sm:$0xff] }
  0x24   : > { %1818 = vmatprep.subr.bf16.mxu0 %v1817_v22  ;;  %v964_v34 = vld [vmem:[%s2635_s7 + $0x38] sm:$0xff]  ;;  %vm1959_vm8 = vmpackc.low %vm1325_vm7, %vm1325_vm7 }
  0x26   : > { %1796 = vmatpush3.bf16.msra.mxu1 %v1795_v19  ;;  %v823_v19 = vld [vmem:[%s2633_s5 + $0x40] sm:$0xff] }
  0x27   : > { %1820 = vmatpush3.bf16.msra.mxu0 %v1819_v26  ;;  %1830 = vmatprep.subr.bf16.mxu1 %v1829_v31  ;;  %v1845_v25 = vpack.c.bf16 %v824_v20, %v823_v19  ;;  %v825_v26 = vld [vmem:[%s2633_s5 + $0x50] sm:$0xff]  ;;  %v978_v19 = vld [vmem:[%s2635_s7 + $0xa8] sm:$0xff] }
  0x28   : > { %1822 = vmatprep.subr.bf16.mxu0 %v1821_v32  ;;  %v1849_v29 = vpack.c.bf16 %v826_v27, %v825_v26  ;;  %v1001_v26 = vld [vmem:[%s2636_s8 + $0x50] sm:$0xff]  ;;  %v1002_v27 = vld [vmem:[%s2636_s8 + $0x58] sm:$0xff] }
  0x2b   : > { %1824 = vmatpush3.bf16.msra.mxu0 %v1823_v36  ;;  %v814_v36 = vld [vmem:[#allocation2 + $0x30] sm:$0x3] }
  0x2c   : > { %1826 = vmatprep.subr.bf16.mxu0 %v1825_v37  ;;  %v838_v37 = vrot.slane %v814_v36, 2  ;;  %v1907_v36 = vpack.c.bf16 %v964_v34, %v963_v33 }
  0x2f   : > { %1828 = vmatpush3.bf16.msra.mxu0 %v1827_v40  ;;  %v1008_v40 = vld [vmem:[%s2636_s8 + $0x88] sm:$0xff] }
  0xe5   : > { %v1681_v42 = vpop.f32.mrb[0].mxu0 }
  0xe6   : > { %v543_v43 = vadd.f32 %v1681_v42, %v1468_v41  ;;  %v537_v44 = vpop.f32.mrb[1].mxu0  ;;  %v991_v42 = vld [vmem:[%s2636_s8] sm:$0xff] }
  0xe7   : > { %v538_v45 = vadd.f32 %v1468_v41, %v537_v44  ;;  %v1861_v41 = vpack.c.bf16 %v1008_v40, %v1007_v39  ;;  %v1004_v39 = vld [vmem:[%s2636_s8 + $0x68] sm:$0xff] }
  0xe8   : > { %v547_v46 = vmul.f32 0.5, %v543_v43 }
  0xe9   : > { %v546_v47 = vmul.f32 0.5, %v538_v45  ;;  %1862 = vmatprep.subr.bf16.mxu0 %v1861_v41 }
  0xea   : > { %1975 = vtanh.f32 %v547_v46  ;;  %v1010_v46 = vld [vmem:[%s2636_s8 + $0x98] sm:$0xff] }
  0xeb   : > { %1977 = vtanh.f32 %v546_v47 }
  0xf4   : > { %v1976_v48 = vpop.eup %1975 }
  0xf5   : > { %v1978_v49 = vpop.eup %1977  ;;  %v551_v50 = vmul.f32 0.5, %v1976_v48  ;;  %v993_v48 = vld [vmem:[%s2636_s8 + $0x10] sm:$0xff] }
  0xf6   : > { %v550_v51 = vmul.f32 0.5, %v1978_v49  ;;  %v994_v49 = vld [vmem:[%s2636_s8 + $0x18] sm:$0xff] }
  0xf7   : > { %v553_v52 = vadd.f32 0.5, %v551_v50  ;;  %v1867_v50 = vpack.c.bf16 %v994_v49, %v993_v48  ;;  %v1022_v49 = vld [vmem:[%s2636_s8 + $0xf8] sm:$0xff] }
  0xf8   : > { %v552_v53 = vadd.f32 0.5, %v550_v51  ;;  %v1011_v51 = vld [vmem:[%s2636_s8 + $0xa0] sm:$0xff] }
  0xf9   : > { %v2296_v54 = vmul.f32 %v553_v52, %v543_v43  ;;  %v992_v43 = vld [vmem:[%s2636_s8 + $0x8] sm:$0xff] }
  0xfa   : > { %v554_v55 = vmul.f32 %v552_v53, %v538_v45  ;;  %v1863_v44 = vpack.c.bf16 %v992_v43, %v991_v42  ;;  %v1009_v45 = vld [vmem:[%s2636_s8 + $0x90] sm:$0xff]  ;;  %v1012_v52 = vld [vmem:[%s2636_s8 + $0xa8] sm:$0xff]  ;;  %v981_v42 = vld [vmem:[%s2635_s7 + $0xc0] sm:$0xff] }
  0xfb   : > { %557 = vst [vmem:[#allocation2 + $0x20] sm:$0xff] %v2296_v54  ;;  %v561_v56 = vrot.slane %v2296_v54, 1  ;;  %v836_v9 = vrot.slane %v2296_v54, 2  ;;  %v1865_v47 = vpack.c.bf16 %v1010_v46, %v1009_v45  ;;  %v1869_v53 = vpack.c.bf16 %v1012_v52, %v1011_v51  ;;  %v982_v43 = vld [vmem:[%s2635_s7 + $0xc8] sm:$0xff]  ;;  %v965_v45 = vld [vmem:[%s2635_s7 + $0x40] sm:$0xff]  ;;  %v1006_v51 = vld [vmem:[%s2636_s8 + $0x78] sm:$0xff] }
  0xfc   : > { %556 = vst [vmem:[#allocation2 + $0x10] sm:$0xff] %v554_v55  ;;  %v560_v60 = vrot.slane %v554_v55, 1  ;;  %v724_v10 = vrot.slane %v554_v55, 6  ;;  %v966_v46 = vld [vmem:[%s2635_s7 + $0x48] sm:$0xff] }
  0xfd   : > { %568 = vst [vmem:[#allocation2 + $0x28] sm:$0x7f] %v561_v56  ;;  %v839_v38 = vsel %vm834_vm4, %v836_v9, %v838_v37  ;;  %v1020_v37 = vld [vmem:[%s2636_s8 + $0xe8] sm:$0xff]  ;;  %v1911_v48 = vpack.c.bf16 %v966_v46, %v965_v45  ;;  %v1199_v45 = vld [vmem:[%s2637_s9 + $0x18] sm:$0xff] }
  0xfe   : > { %v562_v61 = vsel %vm467_vm0, %v560_v60, %v561_v56  ;;  %566 = vst [vmem:[#allocation2 + $0x8] sm:$0x80] %v560_v60  ;;  %v725_v22 = vsel %vm722_vm5, %v723_v12, %v724_v10  ;;  %v1893_v60 = vpack.c.bf16 %v974_v58, %v973_v57  ;;  %v967_v57 = vld [vmem:[%s2635_s7 + $0x50] sm:$0xff]  ;;  %v968_v58 = vld [vmem:[%s2635_s7 + $0x58] sm:$0xff] }
  0xff   : > { %705 = vmatprep.mubr.f32.mxu1 %v562_v61  ;;  %v727_v14 = vrot.slane %v562_v61, 6  ;;  %v957_v61 = vld [vmem:[%s2635_s7] sm:$0xff] }
 0x100   : > { %706 = vmatmul.mubr.f32.vlgmr.msra.gmra.mrb[0].mxu1 %v554_v55  ;;  %v996_v55 = vld [vmem:[%s2636_s8 + $0x28] sm:$0xff] }
 0x101   : > { %1832 = vmatpush3.bf16.msra.mxu1 %v1829_v31  ;;  %v828_v31 = vld [vmem:[%s2633_s5 + $0x68] sm:$0xff] }
 0x102   : > { %1834 = vmatprep.subr.bf16.mxu1 %v1833_v62  ;;  %v573_v18 = vld [vmem:[#allocation2 + $0x20] sm:$0x3f]  ;;  %v1853_v32 = vpack.c.bf16 %v828_v31, %v827_v30  ;;  %v979_v30 = vld [vmem:[%s2635_s7 + $0xb0] sm:$0xff]  ;;  %v980_v31 = vld [vmem:[%s2635_s7 + $0xb8] sm:$0xff] }
 0x103   : > { %v812_v5 = vld [vmem:[#allocation2 + $0x10] sm:$0xfc]  ;;  %v729_v23 = vrot.slane %v573_v18, 6  ;;  %v977_v18 = vld [vmem:[%s2635_s7 + $0xa0] sm:$0xff] }
 0x104   : > { %v608_v6 = vld [vmem:[#allocation2 + $0x28] sm:$0xff]  ;;  %v835_v8 = vrot.slane %v812_v5, 2  ;;  %v1901_v20 = vpack.c.bf16 %v978_v19, %v977_v18 }
 0x105   : > { %v574_v7 = vld [vmem:[#allocation2 + $0x28] sm:$0x3f]  ;;  %710 = vmatprep.mubr.f32.mxu1 %v608_v6  ;;  %v570_v11 = vld [vmem:[#allocation2 + $0x8] sm:$0xc0]  ;;  %1836 = vmatpush3.bf16.msra.mxu1 %v1833_v62  ;;  %v730_v28 = vsel %vm722_vm5, %v724_v10, %v729_v23  ;;  %v975_v6 = vld [vmem:[%s2635_s7 + $0x90] sm:$0xff] }
 0x106   : > { %v726_v15 = vrot.slane %v570_v11, 6  ;;  %711 = vmatmul.mubr.f32.gmra.mrb[2].mxu1 %v2296_v54  ;;  %v731_v16 = vrot.slane %v574_v7, 6  ;;  %v837_v17 = vsel %vm834_vm4, %v835_v8, %v836_v9  ;;  %1838 = vmatprep.subr.bf16.mxu1 %v1837_v2  ;;  %v995_v54 = vld [vmem:[%s2636_s8 + $0x20] sm:$0xff]  ;;  %v958_v62 = vld [vmem:[%s2635_s7 + $0x8] sm:$0xff]  ;;  %v976_v7 = vld [vmem:[%s2635_s7 + $0x98] sm:$0xff] }
 0x107   : > { %1714 = vmatprep.mubr.f32.mxu1 %v837_v17  ;;  %v1871_v56 = vpack.c.bf16 %v996_v55, %v995_v54  ;;  %v1895_v0 = vpack.c.bf16 %v958_v62, %v957_v61  ;;  %v1897_v8 = vpack.c.bf16 %v976_v7, %v975_v6  ;;  %v959_v9 = vld [vmem:[%s2635_s7 + $0x10] sm:$0xff]  ;;  %v960_v10 = vld [vmem:[%s2635_s7 + $0x18] sm:$0xff]  ;;  %v1015_v11 = vld [vmem:[%s2636_s8 + $0xc0] sm:$0xff]  ;;  %v1915_v61 = vpack.c.bf16 %v968_v58, %v967_v57 }
 0x108   : > { %v728_v21 = vsel %vm722_vm5, %v726_v15, %v727_v14  ;;  %v732_v24 = vsel %vm722_vm5, %v727_v14, %v731_v16  ;;  %v1899_v12 = vpack.c.bf16 %v960_v10, %v959_v9  ;;  %v999_v14 = vld [vmem:[%s2636_s8 + $0x40] sm:$0xff]  ;;  %v1000_v15 = vld [vmem:[%s2636_s8 + $0x48] sm:$0xff]  ;;  %v1017_v23 = vld [vmem:[%s2636_s8 + $0xd0] sm:$0xff] }
 0x109   : > { %801 = vmatprep.mubr.f32.mxu0 %v728_v21  ;;  %1840 = vmatpush3.bf16.msra.mxu1 %v1837_v2  ;;  %v997_v2 = vld [vmem:[%s2636_s8 + $0x30] sm:$0xff]  ;;  %v1879_v17 = vpack.c.bf16 %v1000_v15, %v999_v14  ;;  %v961_v21 = vld [vmem:[%s2635_s7 + $0x20] sm:$0xff]  ;;  %v984_v55 = vld [vmem:[%s2635_s7 + $0xd8] sm:$0xff] }
 0x10a   : > { %802 = vmatmul.mubr.f32.vlgmr.msra.gmra.mrb[2].mxu0 %v725_v22  ;;  %1842 = vmatprep.subr.bf16.mxu1 %v1841_v13  ;;  %v1875_v5 = vpack.c.bf16 %v998_v3, %v997_v2  ;;  %v962_v22 = vld [vmem:[%s2635_s7 + $0x28] sm:$0xff]  ;;  %v983_v54 = vld [vmem:[%s2635_s7 + $0xd0] sm:$0xff]  ;;  %v969_v2 = vld [vmem:[%s2635_s7 + $0x60] sm:$0xff] }
 0x10b   : > { %806 = vmatprep.mubr.f32.mxu0 %v732_v24  ;;  %1864 = vmatpush3.bf16.msra.mxu0 %v1863_v44  ;;  %v1903_v24 = vpack.c.bf16 %v962_v22, %v961_v21  ;;  %v1909_v44 = vpack.c.bf16 %v982_v43, %v981_v42  ;;  %v1197_v62 = vld [vmem:[%s2637_s9 + $0x8] sm:$0xff]  ;;  %v988_v6 = vld [vmem:[%s2635_s7 + $0xf8] sm:$0xff]  ;;  %v971_v9 = vld [vmem:[%s2635_s7 + $0x70] sm:$0xff] }
 0x10c   : > { %1866 = vmatprep.subr.bf16.mxu0 %v1865_v47  ;;  %v1021_v47 = vld [vmem:[%s2636_s8 + $0xf0] sm:$0xff]  ;;  %v972_v10 = vld [vmem:[%s2635_s7 + $0x78] sm:$0xff] }
 0x10d   : > { %1844 = vmatpush3.bf16.msra.mxu1 %v1841_v13  ;;  %v1016_v13 = vld [vmem:[%s2636_s8 + $0xc8] sm:$0xff]  ;;  %v1889_v52 = vpack.c.bf16 %v1022_v49, %v1021_v47  ;;  %v1200_v49 = vld [vmem:[%s2637_s9 + $0x20] sm:$0xff] }
 0x10e   : > { %807 = vmatmul.mubr.f32.gmra.mrb[4].mxu0 %v730_v28  ;;  %1846 = vmatprep.subr.bf16.mxu1 %v1845_v25  ;;  %v1877_v16 = vpack.c.bf16 %v1016_v13, %v1015_v11  ;;  %v1923_v11 = vpack.c.bf16 %v972_v10, %v971_v9 }
 0x10f   : > { %1868 = vmatpush3.bf16.msra.mxu0 %v1867_v50  ;;  %v1005_v50 = vld [vmem:[%s2636_s8 + $0x70] sm:$0xff] }
 0x110   : > { %1870 = vmatprep.subr.bf16.mxu0 %v1869_v53  ;;  %v1891_v53 = vpack.c.bf16 %v1006_v51, %v1005_v50  ;;  %v1201_v50 = vld [vmem:[%s2637_s9 + $0x28] sm:$0xff]  ;;  %v951_v51 = vld [vmem:[#allocation2] sm:$0xc0] }
 0x111   : > { %1848 = vmatpush3.bf16.msra.mxu1 %v1845_v25  ;;  %v1018_v25 = vld [vmem:[%s2636_s8 + $0xd8] sm:$0xff] }
 0x112   : > { %1850 = vmatprep.subr.bf16.mxu1 %v1849_v29  ;;  %v1881_v28 = vpack.c.bf16 %v1018_v25, %v1017_v23 }
 0x113   : > { %1872 = vmatpush3.bf16.msra.mxu0 %v1871_v56  ;;  %v1913_v56 = vpack.c.bf16 %v984_v55, %v983_v54  ;;  %v1203_v54 = vld [vmem:[%s2637_s9 + $0x38] sm:$0xff] }
 0x114   : > { %1874 = vmatprep.subr.bf16.mxu0 %v1873_v4  ;;  %v970_v4 = vld [vmem:[%s2635_s7 + $0x68] sm:$0xff] }
 0x115   : > { %1852 = vmatpush3.bf16.msra.mxu1 %v1849_v29  ;;  %v1883_v29 = vpack.c.bf16 %v1002_v27, %v1001_v26  ;;  %v1919_v7 = vpack.c.bf16 %v970_v4, %v969_v2  ;;  %v1472_v27 = vld [vmem:[%s2634_s6] ss:$0 sm:$0xff] }
 0x116   : > { %1854 = vmatprep.subr.bf16.mxu1 %v1853_v32 }
 0x117   : > { %1876 = vmatpush3.bf16.msra.mxu0 %v1875_v5  ;;  %v987_v5 = vld [vmem:[%s2635_s7 + $0xf0] sm:$0xff] }
 0x118   : > { %1878 = vmatprep.subr.bf16.mxu0 %v1877_v16 }
 0x119   : > { %1856 = vmatpush3.bf16.msra.mxu1 %v1853_v32  ;;  %v1905_v32 = vpack.c.bf16 %v980_v31, %v979_v30 }
 0x11a   : > { %1858 = vmatprep.subr.bf16.mxu1 %v1857_v35 }
 0x11b   : > { %1880 = vmatpush3.bf16.msra.mxu0 %v1879_v17 }
 0x11c   : > { %1882 = vmatprep.subr.bf16.mxu0 %v1881_v28 }
 0x11d   : > { %1860 = vmatpush3.bf16.msra.mxu1 %v1857_v35  ;;  %v1019_v35 = vld [vmem:[%s2636_s8 + $0xe0] sm:$0xff] }
 0x11e   : > { %1894 = vmatprep.subr.bf16.mxu1 %v1893_v60  ;;  %v1885_v40 = vpack.c.bf16 %v1020_v37, %v1019_v35  ;;  %v1196_v60 = vld [vmem:[%s2637_s9] sm:$0xff] }
 0x11f   : > { %1884 = vmatpush3.bf16.msra.mxu0 %v1883_v29  ;;  %v2525_v63 = vpack.c.bf16 %v1197_v62, %v1196_v60 }
 0x120   : > { %1715 = vmatmul.mubr.f32.vlgmr.msra.gmra.mrb[4].mxu1 %v839_v38  ;;  %v1003_v38 = vld [vmem:[%s2636_s8 + $0x60] sm:$0xff]  ;;  %1886 = vmatprep.subr.bf16.mxu0 %v1885_v40 }
 0x121   : > { %1896 = vmatpush3.bf16.msra.mxu1 %v1895_v0  ;;  %v1887_v41 = vpack.c.bf16 %v1004_v39, %v1003_v38  ;;  %v985_v0 = vld [vmem:[%s2635_s7 + $0xe0] sm:$0xff] }
 0x122   : > { %1898 = vmatprep.subr.bf16.mxu1 %v1897_v8  ;;  %v1917_v3 = vpack.c.bf16 %v986_v1, %v985_v0  ;;  %v1921_v8 = vpack.c.bf16 %v988_v6, %v987_v5  ;;  %v1204_v6 = vld [vmem:[%s2637_s9 + $0x40] sm:$0xff] }
 0x123   : > { %1888 = vmatpush3.bf16.msra.mxu0 %v1887_v41 }
 0x124   : > { %1890 = vmatprep.subr.bf16.mxu0 %v1889_v52  ;;  %v1933_v52 = vpack.c.bf16 %v1201_v50, %v1200_v49 }
 0x125   : > { %1900 = vmatpush3.bf16.msra.mxu1 %v1899_v12 }
 0x126   : > { %1902 = vmatprep.subr.bf16.mxu1 %v1901_v20 }
 0x127   : > { %1892 = vmatpush3.bf16.msra.mxu0 %v1891_v53  ;;  %v1202_v53 = vld [vmem:[%s2637_s9 + $0x30] sm:$0xff] }
 0x128   : > { %1926 = vmatprep.subr.bf16.mxu0 %v2525_v63  ;;  %v1937_v0 = vpack.c.bf16 %v1203_v54, %v1202_v53 }
 0x129   : > { %1904 = vmatpush3.bf16.msra.mxu1 %v1903_v24 }
 0x12a   : > { %1906 = vmatprep.subr.bf16.mxu1 %v1905_v32 }
 0x12d   : > { %1908 = vmatpush3.bf16.msra.mxu1 %v1907_v36 }
 0x12e   : > { %1910 = vmatprep.subr.bf16.mxu1 %v1909_v44  ;;  %v1198_v44 = vld [vmem:[%s2637_s9 + $0x10] sm:$0xff] }
 0x131   : > { %1912 = vmatpush3.bf16.msra.mxu1 %v1911_v48  ;;  %v1929_v48 = vpack.c.bf16 %v1199_v45, %v1198_v44 }
 0x132   : > { %1914 = vmatprep.subr.bf16.mxu1 %v1913_v56 }
 0x135   : > { %1916 = vmatpush3.bf16.msra.mxu1 %v1915_v61 }
 0x136   : > { %1918 = vmatprep.subr.bf16.mxu1 %v1917_v3 }
 0x139   : > { %1920 = vmatpush3.bf16.msra.mxu1 %v1919_v7  ;;  %v1205_v7 = vld [vmem:[%s2637_s9 + $0x48] sm:$0xff] }
 0x13a   : > { %1922 = vmatprep.subr.bf16.mxu1 %v1921_v8 }
 0x13d   : > { %1924 = vmatpush3.bf16.msra.mxu1 %v1923_v11 }
 0x1d3   : > { %v1516_v12 = vpop.f32.mrb[0].mxu1 }
 0x1d4   : > { %v1517_v13 = vpop.f32.mrb[1].mxu1 }
 0x1d5   : > { %v1518_v14 = vadd.f32 %v1517_v13, %v1516_v12  ;;  %v1941_v12 = vpack.c.bf16 %v1205_v7, %v1204_v6  ;;  %v1206_v13 = vld [vmem:[%s2637_s9 + $0x50] sm:$0xff] }
 0x1d9   : > { %v1519_v15 = vpop.f32.mrb[2].mxu1 }
 0x1da   : > { %v1520_v16 = vpop.f32.mrb[3].mxu1 }
 0x1db   : > { %v1521_v17 = vadd.f32 %v1520_v16, %v1519_v15 }
 0x1dd   : > { %v1554_v18 = vpop.f32.mrb[2].mxu0 }
 0x1de   : > { %v1555_v19 = vpop.f32.mrb[3].mxu0 }
 0x1df   : > { %v1556_v20 = vadd.f32 %v1555_v19, %v1554_v18  ;;  %v1209_v18 = vld [vmem:[%s2637_s9 + $0x68] sm:$0xff] }
 0x1e1   : > { %v1557_v21 = vpop.f32.mrb[4].mxu0  ;;  %v804_v22 = vadd.f32 %v1556_v20, %v1518_v14  ;;  %v1207_v14 = vld [vmem:[%s2637_s9 + $0x58] sm:$0xff]  ;;  %v1210_v20 = vld [vmem:[%s2637_s9 + $0x70] sm:$0xff] }
 0x1e2   : > { %v1558_v23 = vpop.f32.mrb[5].mxu0  ;;  %v1945_v16 = vpack.c.bf16 %v1207_v14, %v1206_v13 }
 0x1e3   : > { %v1559_v24 = vadd.f32 %v1558_v23, %v1557_v21  ;;  %v1211_v21 = vld [vmem:[%s2637_s9 + $0x78] sm:$0xff]  ;;  %v1195_v23 = vld [vmem:[#allocation2 + $0x30] sm:$0x3] }
 0x1e5   : > { %v809_v25 = vadd.f32 %v1559_v24, %v1521_v17  ;;  %v1208_v17 = vld [vmem:[%s2637_s9 + $0x60] sm:$0xff]  ;;  %v1218_v24 = vrot.slane %v1195_v23, 2 }
 0x1e6   : > { %v1949_v19 = vpack.c.bf16 %v1209_v18, %v1208_v17 }
 0x1f3   : > { %v1716_v26 = vpop.f32.mrb[4].mxu1 }
 0x1f4   : > { %v918_v28 = vadd.f32 %v1716_v26, %v809_v25  ;;  %v908_v29 = vpop.f32.mrb[5].mxu1  ;;  %v1997_v26 = vmov 0.0|0.0  }
 0x1f5   : > { %v917_v30 = vadd.f32 %v908_v29, %v804_v22  ;;  %v1953_v22 = vpack.c.bf16 %v1211_v21, %v1210_v20  ;;  %1957 = vmatprep.subr.bf16.mxu1 %v1997_v26 }
 0x1f6   : > { %v927_v31 = vadd.f32 %v1472_v27, %v918_v28  ;;  %v1999_v28 = vmov 0  }
 0x1f7   : > { %v926_v32 = vadd.f32 %v1472_v27, %v917_v30  ;;  %v1319_v27 = vld [vmem:[%s2640_s12] sm:$0x7]  ;;  %1974 = vset.pattern.permute.xlu0 %v1999_v28 }
 0x1f8   : > { %v929_v33 = vmul.f32 0.5, %v927_v31  ;;  %1322 = vperm.xlu0 %1974, %v1319_v27  }
 0x1f9   : > { %v928_v34 = vmul.f32 0.5, %v926_v32 }
 0x1fa   : > { %1979 = vtanh.f32 %v929_v33 }
 0x1fb   : > { %1981 = vtanh.f32 %v928_v34 }
 0x204   : > { %v1980_v35 = vpop.eup %1979 }
 0x205   : > { %v1982_v36 = vpop.eup %1981  ;;  %v933_v37 = vmul.f32 0.5, %v1980_v35 }
 0x206   : > { %v932_v38 = vmul.f32 0.5, %v1982_v36 }
 0x207   : > { %v935_v39 = vadd.f32 0.5, %v933_v37 }
 0x208   : > { %v934_v40 = vadd.f32 0.5, %v932_v38 }
 0x209   : > { %v2555_v41 = vmul.f32 %v935_v39, %v927_v31 }
 0x20a   : > { %v936_v42 = vmul.f32 %v934_v40, %v926_v32 }
 0x20b   : > { %939 = vst [vmem:[#allocation2 + $0x20] sm:$0xff] %v2555_v41  ;;  %v943_v43 = vrot.slane %v2555_v41, 1  ;;  %v1216_v60 = vrot.slane %v2555_v41, 2 }
 0x20c   : > { %938 = vst [vmem:[#allocation2 + $0x10] sm:$0xff] %v936_v42  ;;  %v942_v46 = vrot.slane %v936_v42, 1  ;;  %v1105_v61 = vrot.slane %v936_v42, 6 }
 0x20d   : > { %950 = vst [vmem:[#allocation2 + $0x28] sm:$0x7f] %v943_v43  ;;  %v1219_v25 = vsel %vm834_vm4, %v1216_v60, %v1218_v24 }
 0x20e   : > { %v944_v47 = vsel %vm467_vm0, %v942_v46, %v943_v43  ;;  %948 = vst [vmem:[#allocation2 + $0x8] sm:$0x80] %v942_v46  ;;  %v1473_v43 = vld [vmem:[%s2638_s10] ss:$0 sm:$0xff] }
 0x20f   : > { %1087 = vmatprep.mubr.f32.mxu0 %v944_v47  ;;  %v1108_v1 = vrot.slane %v944_v47, 6 }
 0x210   : > { %1088 = vmatmul.mubr.f32.vlgmr.msra.gmra.mrb[6].mxu0 %v936_v42 }
 0x211   : > { %1928 = vmatpush3.bf16.msra.mxu0 %v2525_v63  ;;  %v1104_v63 = vrot.slane %v951_v51, 6 }
 0x212   : > { %1930 = vmatprep.subr.bf16.mxu0 %v1929_v48  ;;  %v955_v5 = vld [vmem:[#allocation2 + $0x20] sm:$0x3f] }
 0x213   : > { %v1193_v55 = vld [vmem:[#allocation2 + $0x10] sm:$0xfc]  ;;  %v1106_v9 = vsel %vm722_vm5, %v1104_v63, %v1105_v61  ;;  %v1110_v10 = vrot.slane %v955_v5, 6 }
 0x214   : > { %v990_v56 = vld [vmem:[#allocation2 + $0x28] sm:$0xff]  ;;  %v1215_v58 = vrot.slane %v1193_v55, 2 }
 0x215   : > { %v956_v57 = vld [vmem:[#allocation2 + $0x28] sm:$0x3f]  ;;  %1092 = vmatprep.mubr.f32.mxu0 %v990_v56  ;;  %v952_v62 = vld [vmem:[#allocation2 + $0x8] sm:$0xc0]  ;;  %1932 = vmatpush3.bf16.msra.mxu0 %v1929_v48  ;;  %v1111_v15 = vsel %vm722_vm5, %v1105_v61, %v1110_v10  ;;  %v1318_v61 = vld [vmem:[%s2639_s11] sm:$0x7] }
 0x216   : > { %v1107_v2 = vrot.slane %v952_v62, 6  ;;  %1093 = vmatmul.mubr.f32.gmra.mrb[8].mxu0 %v2555_v41  ;;  %v1112_v3 = vrot.slane %v956_v57, 6  ;;  %v1217_v4 = vsel %vm834_vm4, %v1215_v58, %v1216_v60  ;;  %1934 = vmatprep.subr.bf16.mxu0 %v1933_v52 }
 0x217   : > { %1749 = vmatprep.mubr.f32.mxu0 %v1217_v4 }
 0x218   : > { %v1109_v8 = vsel %vm722_vm5, %v1107_v2, %v1108_v1  ;;  %v1113_v11 = vsel %vm722_vm5, %v1108_v1, %v1112_v3 }
 0x219   : > { %1182 = vmatprep.mubr.f32.mxu1 %v1109_v8  ;;  %1936 = vmatpush3.bf16.msra.mxu0 %v1933_v52 }
 0x21a   : > { %1183 = vmatmul.mubr.f32.vlgmr.msra.gmra.mrb[6].mxu1 %v1106_v9  ;;  %1938 = vmatprep.subr.bf16.mxu0 %v1937_v0 }
 0x21b   : > { %1187 = vmatprep.mubr.f32.mxu1 %v1113_v11 }
 0x21d   : > { %1940 = vmatpush3.bf16.msra.mxu0 %v1937_v0 }
 0x21e   : > { %1188 = vmatmul.mubr.f32.gmra.mrb[8].mxu1 %v1111_v15  ;;  %1942 = vmatprep.subr.bf16.mxu0 %v1941_v12 }
 0x21f   : > { %1756 = vmatprep.mubr.msk.f32.mxu1 %vm1998_vm6, %v1996_v59 }
 0x221   : > { %1944 = vmatpush3.bf16.msra.mxu0 %v1941_v12 }
 0x222   : > { %1946 = vmatprep.subr.bf16.mxu0 %v1945_v16 }
 0x225   : > { %1948 = vmatpush3.bf16.msra.mxu0 %v1945_v16 }
 0x226   : > { %1950 = vmatprep.subr.bf16.mxu0 %v1949_v19 }
 0x229   : > { %1952 = vmatpush3.bf16.msra.mxu0 %v1949_v19 }
 0x22a   : > { %1954 = vmatprep.subr.bf16.mxu0 %v1953_v22 }
 0x22d   : > { %1956 = vmatpush3.bf16.msra.mxu0 %v1953_v22 }
 0x230   : > { %1750 = vmatmul.mubr.f32.vlgmr.msra.gmra.mrb[10].mxu0 %v1219_v25 }
 0x277   : > { %v1323_v62 = vpop.permute.xlu0 %1322 }
 0x2e3   : > { %v1610_v29 = vpop.f32.mrb[6].mxu0 }
 0x2e4   : > { %v1611_v30 = vpop.f32.mrb[7].mxu0 }
 0x2e5   : > { %v1612_v31 = vadd.f32 %v1611_v30, %v1610_v29 }
 0x2e9   : > { %v1613_v32 = vpop.f32.mrb[8].mxu0 }
 0x2ea   : > { %v1614_v33 = vpop.f32.mrb[9].mxu0 }
 0x2eb   : > { %v1615_v34 = vadd.f32 %v1614_v33, %v1613_v32 }
 0x2ed   : > { %v1648_v35 = vpop.f32.mrb[6].mxu1 }
 0x2ee   : > { %v1649_v36 = vpop.f32.mrb[7].mxu1 }
 0x2ef   : > { %v1650_v37 = vadd.f32 %v1649_v36, %v1648_v35 }
 0x2f1   : > { %v1651_v38 = vpop.f32.mrb[8].mxu1  ;;  %v1185_v39 = vadd.f32 %v1650_v37, %v1612_v31 }
 0x2f2   : > { %v1652_v40 = vpop.f32.mrb[9].mxu1 }
 0x2f3   : > { %v1653_v59 = vadd.f32 %v1652_v40, %v1651_v38 }
 0x2f5   : > { %v1190_v41 = vadd.f32 %v1653_v59, %v1615_v34 }
 0x303   : > { %v1751_v42 = vpop.f32.mrb[10].mxu0 }
 0x304   : > { %v1298_v44 = vadd.f32 %v1751_v42, %v1190_v41  ;;  %v1288_v45 = vpop.f32.mrb[11].mxu0 }
 0x305   : > { %v1297_v46 = vadd.f32 %v1288_v45, %v1185_v39 }
 0x306   : > { %v1307_v47 = vadd.f32 %v1473_v43, %v1298_v44 }
 0x307   : > { %v1306_v48 = vadd.f32 %v1473_v43, %v1297_v46 }
 0x308   : > { %v1309_v49 = vmul.f32 0.5, %v1307_v47 }
 0x309   : > { %v1308_v50 = vmul.f32 0.5, %v1306_v48 }
 0x30a   : > { %1983 = vtanh.f32 %v1309_v49 }
 0x30b   : > { %1985 = vtanh.f32 %v1308_v50 }
 0x314   : > { %v1984_v51 = vpop.eup %1983 }
 0x315   : > { %v1986_v52 = vpop.eup %1985  ;;  %v1313_v53 = vmul.f32 0.5, %v1984_v51 }
 0x316   : > { %v1312_v54 = vmul.f32 0.5, %v1986_v52 }
 0x317   : > { %v1315_v55 = vadd.f32 0.5, %v1313_v53 }
 0x318   : > { %v1314_v56 = vadd.f32 0.5, %v1312_v54 }
 0x319   : > { %v1317_v57 = vmul.f32 %v1315_v55, %v1307_v47 }
 0x31a   : > { %v1316_v58 = vmul.f32 %v1314_v56, %v1306_v48 }
 0x31c   : > { %v1958_v60 = vpack.c.bf16 %v1317_v57, %v1316_v58 }
 0x31e   : > { %1960 = vmatpush3.bf16.xpose.msk.msra.mxu1 %vm1959_vm8, %v1958_v60 }
 0x325   : > { %1757 = vmatmul.mubr.msk.f32.vlgmr.msra.gmra.mrb[10].mxu1 %vm1325_vm7, %v1318_v61 }
 0x3f8   : > { %v1401_v63 = vpop.f32.mrb[10].mxu1 }
 0x3f9   : > { %v1402_v0 = vadd.f32 %v1401_v63, %v1323_v62  ;;  %v1758_v1 = vpop.f32.mrb[11].mxu1 }
 0x3fb   : > { %1406 = vst.msk [vmem:[%s438_s21] sm:$0x7] %vm1405_vm9, %v1402_v0 }
 0x3fc PF: > { %s23_s25 = sadd.s32 1, %s1993_s25  }
 0x3fd   : > { %p20_p4 = scmp.ge.s32.totalorder %s23_s25, 4  }
 0x3ff   :  { %22 = sbr.rel (!%p20_p4) target bundleno = 1 (0x1), region = 102 }

</bundles_post_ra>
